<compile_context>
chip_gen: v6e
topology: v6e:2x2x1
jax: 0.10.0
libtpu: 0.0.40
codegen_flags: <defaults>
</compile_context>

<pallas_src>
import functools

import jax
import jax.numpy as jnp
from jax import lax
from jax.experimental import pallas as pl
from jax.experimental.pallas import tpu as pltpu


def _ntxent_kernel(zi_ref, zj_ref, loss_ref,
                   l_row, l_col, acc,
                   *, inv_temp, n, bn):
    i = pl.program_id(0)                 # row-tile index over z_i
    n_i = pl.num_programs(0)
    bm = zi_ref.shape[0]                 # static row block
    n_j = zj_ref.shape[0] // bn          # static number of column tiles
    c = jnp.float32(inv_temp)            # constant LSE shift: |logit| <= 1/temp

    # ---- init persistent accumulators on the first grid step --------------
    @pl.when(i == 0)
    def _():
        acc[0] = jnp.float32(0.0)
        l_col[...] = jnp.zeros_like(l_col)

    # per-row-tile denominator accumulator
    l_row[...] = jnp.zeros_like(l_row)

    # z_i tile: already normalized and scaled by 1/temperature in the wrapper
    zi = zi_ref[...]                                       # (bm, D), mm dtype

    def tile_step(j, zj_tile):
        # sim = zi_s @ zj_n^T on the MXU (no transpose), f32 accumulation
        sim = lax.dot_general(
            zi, zj_tile,
            dimension_numbers=(((1,), (1,)), ((), ())),
            preferred_element_type=jnp.float32)            # (bm, bn)
        e = jnp.exp(sim - c)                               # ONE exp per element
        l_row[...] += jnp.sum(e, axis=1, keepdims=True)    # row half
        l_col[j] += jnp.sum(e, axis=0, keepdims=True)      # column half

    if n_j <= 16:
        # static unroll: slices of the resident z_j are compile-time views
        for j in range(n_j):
            tile_step(j, zj_ref[j * bn:(j + 1) * bn, :])
    else:
        @pl.loop(0, n_j)
        def _(j):
            off = pl.multiple_of(j * bn, bn)
            tile_step(j, zj_ref[pl.ds(off, bn), :])

    # ---- correct-logit (diagonal) term for this row tile (f32) -------------
    zj_diag = zj_ref[pl.ds(pl.multiple_of(i * bm, bm), bm), :]
    diag_sum = jnp.sum(zi.astype(jnp.float32) * zj_diag.astype(jnp.float32))

    # ---- row half of the cross entropy for this row tile -------------------
    acc[0] += (jnp.float32(bm) * c
               + jnp.sum(jnp.log(l_row[...]))
               - jnp.float32(2.0) * diag_sum)

    # ---- last grid step: add the column half, write the mean loss ----------
    @pl.when(i == n_i - 1)
    def _():
        col_lse_sum = jnp.float32(n) * c + jnp.sum(jnp.log(l_col[...]))
        loss_ref[0, 0] = (acc[0] + col_lse_sum) / jnp.float32(2 * n)


def _pick_block(n, cap=512):
    for t in (512, 256, 128, 64, 32, 16, 8):
        if t <= cap and t <= n and n % t == 0:
            return t
    return n


def ntxent_loss(z_i, z_j, temperature=1.0, *, block_rows=None, block_cols=None,
                matmul_dtype=jnp.bfloat16):
    n, d = z_i.shape
    assert z_j.shape == (n, d)
    # Constant-shift LSE relies on |logit| <= 1/temperature (cosine sims).
    assert temperature >= 0.03, "temperature < 0.03 needs the online-max path"
    inv_temp = 1.0 / float(temperature)

    # ---- normalize once, fold 1/temperature into z_i, cast to MXU dtype ----
    def _norm(z):
        z = z.astype(jnp.float32)
        nrm = jnp.maximum(jnp.sqrt(jnp.sum(z * z, axis=-1, keepdims=True)),
                          jnp.float32(1e-12))              # matches F.normalize
        return z / nrm

    zi_n = (_norm(z_i) * jnp.float32(inv_temp)).astype(matmul_dtype)
    zj_n = _norm(z_j).astype(matmul_dtype)

    # Lane-dense feature dim: zero-pad D to a multiple of 128 (zeros change
    # neither norms nor dot products).
    if d % 128 != 0:
        pad = 128 - d % 128
        zi_n = jnp.pad(zi_n, ((0, 0), (0, pad)))
        zj_n = jnp.pad(zj_n, ((0, 0), (0, pad)))
        d += pad

    bm = block_rows if block_rows is not None else _pick_block(n, 256)
    bn = block_cols if block_cols is not None else _pick_block(n, 512)
    assert n % bm == 0, f"block_rows {bm} must divide batch {n}"
    assert n % bn == 0, f"block_cols {bn} must divide batch {n}"
    nt = n // bm
    n_j = n // bn

    # ---- VMEM budget derived from shapes (kept <= 56 MiB for v7x) ----------
    itemsize = jnp.dtype(matmul_dtype).itemsize
    resident_zj = 2 * n * d * itemsize          # pipeline double-buffers inputs
    zi_bufs = 2 * bm * d * itemsize
    scratch = bm * 512 + n_j * 8 * max(bn, 128) * 4
    interm = 4 * bm * bn * 4                    # sim / exp / temporaries
    needed = resident_zj + zi_bufs + scratch + interm + (8 << 20)
    if needed > (56 << 20):
        raise ValueError(
            f"configuration needs ~{needed >> 20} MiB VMEM; reduce block sizes "
            "or batch (resident z_j path only).")
    vmem_limit = int(min(max(32 << 20, needed), 56 << 20))

    kernel = functools.partial(_ntxent_kernel, inv_temp=inv_temp, n=n, bn=bn)

    out = pl.pallas_call(
        kernel,
        out_shape=jax.ShapeDtypeStruct((1, 1), jnp.float32),
        grid_spec=pltpu.PrefetchScalarGridSpec(
            num_scalar_prefetch=0,
            grid=(nt,),
            in_specs=[
                # z_i row tile, pipelined across the grid
                pl.BlockSpec((bm, d), lambda i: (i, 0)),
                # z_j fully VMEM-resident (constant block index -> fetched once)
                pl.BlockSpec((n, d), lambda i: (0, 0)),
            ],
            out_specs=pl.BlockSpec(memory_space=pltpu.SMEM),
            scratch_shapes=[
                pltpu.VMEM((bm, 1), jnp.float32),        # l_row (per row tile)
                pltpu.VMEM((n_j, 1, bn), jnp.float32),   # l_col (across row tiles)
                pltpu.SMEM((1,), jnp.float32),           # running scalar loss
            ]),
        compiler_params=pltpu.CompilerParams(
            dimension_semantics=("arbitrary",),
            vmem_limit_bytes=vmem_limit),
    )(zi_n, zj_n)
    return out[0, 0]


def _reference_ntxent(z_i, z_j, temperature=1.0):
    """Pure-JAX reference mirroring the PyTorch module."""
    eps = 1e-12
    zi = z_i / jnp.maximum(jnp.linalg.norm(z_i, axis=-1, keepdims=True), eps)
    zj = z_j / jnp.maximum(jnp.linalg.norm(z_j, axis=-1, keepdims=True), eps)
    sim = (zi @ zj.T) / temperature
    logits = jnp.concatenate([sim, sim.T], axis=0)
    labels = jnp.concatenate([jnp.arange(sim.shape[0])] * 2, axis=0)
    lse = jax.scipy.special.logsumexp(logits, axis=-1)
    correct = logits[jnp.arange(logits.shape[0]), labels]
    return jnp.mean(lse - correct)


if __name__ == "__main__":
    key = jax.random.PRNGKey(0)
    k1, k2, k3, k4 = jax.random.split(key, 4)
    temperature = 0.5

    # Small demo shape (batch of embedding pairs, hidden=32).
    N, D = 8, 32
    z_i = jax.random.normal(k1, (N, D), dtype=jnp.float32)
    z_j = jax.random.normal(k2, (N, D), dtype=jnp.float32)

    ref = _reference_ntxent(z_i, z_j, temperature)

    loss_f32 = jax.block_until_ready(
        ntxent_loss(z_i, z_j, temperature, matmul_dtype=jnp.float32))
    assert jnp.isfinite(loss_f32), "loss is not finite"
    assert jnp.abs(loss_f32 - ref) < 1e-4, f"f32 mismatch: {loss_f32} vs {ref}"

    loss_bf16 = jax.block_until_ready(ntxent_loss(z_i, z_j, temperature))
    assert jnp.isfinite(loss_bf16), "bf16 loss is not finite"
    assert jnp.abs(loss_bf16 - ref) < 5e-2, f"bf16 mismatch: {loss_bf16} vs {ref}"

    # Larger shape exercising the multi-row-tile grid and the in-kernel
    # column loop (grid=(2,), n_j=2 with 128-wide blocks).
    N2, D2 = 256, 128
    z_i2 = jax.random.normal(k3, (N2, D2), dtype=jnp.float32)
    z_j2 = jax.random.normal(k4, (N2, D2), dtype=jnp.float32)
    ref2 = _reference_ntxent(z_i2, z_j2, temperature)
    loss2 = jax.block_until_ready(
        ntxent_loss(z_i2, z_j2, temperature, block_rows=128, block_cols=128,
                    matmul_dtype=jnp.float32))
    assert jnp.abs(loss2 - ref2) < 1e-3, f"tiled mismatch: {loss2} vs {ref2}"

    loss2_bf16 = jax.block_until_ready(
        ntxent_loss(z_i2, z_j2, temperature, block_rows=128, block_cols=128))
    assert jnp.isfinite(loss2_bf16), "tiled bf16 loss is not finite"

    print("KERNEL_OK")
</pallas_src>

<mosaic_0001>
module attributes {stable_mosaic.version = 11 : i64} {
  func.func @_ntxent_kernel(%arg0: i32, %arg1: memref<8x128xf32, #tpu.memory_space<vmem>>, %arg2: memref<8x128xf32, #tpu.memory_space<vmem>>, %arg3: memref<1x1xf32, #tpu.memory_space<smem>>, %arg4: memref<8x1xf32, #tpu.memory_space<vmem>>, %arg5: memref<1x1x8xf32, #tpu.memory_space<vmem>>, %arg6: memref<1xf32, #tpu.memory_space<smem>>) attributes {dimension_semantics = [#tpu.dimension_semantics<arbitrary>], iteration_bounds = array<i64: 1>, scalar_prefetch = 0 : i64, scratch_operands = 3 : i64, tpu.core_type = #tpu.core_type<tc>, window_params = [{transform_indices = @transform_0, window_bounds = array<i64: 8, 128>}, {pipeline_mode = #tpu.pipeline_mode<synchronous>, transform_indices = @transform_1, window_bounds = array<i64: 8, 128>}, {transform_indices = @transform_2, window_bounds = array<i64: 1, 1>}]} {
    %c0_i32 = arith.constant 0 : i32
    %0 = arith.cmpi eq, %arg0, %c0_i32 : i32
    %1 = arith.extui %0 : i1 to i32
    %c0_i32_0 = arith.constant 0 : i32
    %2 = arith.cmpi ne, %1, %c0_i32_0 : i32
    scf.if %2 {
      %cst_33 = arith.constant 0.000000e+00 : f32
      %c0_34 = arith.constant 0 : index
      %49 = memref.load %arg6[%c0_34] : memref<1xf32, #tpu.memory_space<smem>>
      memref.store %cst_33, %arg6[%c0_34] : memref<1xf32, #tpu.memory_space<smem>>
      %cst_35 = arith.constant 0.000000e+00 : f32
      %50 = vector.broadcast %cst_35 : f32 to vector<1x1x8xf32>
      %c0_36 = arith.constant 0 : index
      %c0_37 = arith.constant 0 : index
      %c0_38 = arith.constant 0 : index
      %51 = vector.load %arg5[%c0_36, %c0_37, %c0_38] : memref<1x1x8xf32, #tpu.memory_space<vmem>>, vector<1x1x8xf32>
      tpu.vector_store %arg5[%c0_36, %c0_37, %c0_38], %50 {strides = array<i32>} : memref<1x1x8xf32, #tpu.memory_space<vmem>>, vector<1x1x8xf32>,
    } else {
    }
    %cst = arith.constant 0.000000e+00 : f32
    %3 = vector.broadcast %cst : f32 to vector<8x1xf32>
    %c0 = arith.constant 0 : index
    %c0_1 = arith.constant 0 : index
    %4 = vector.load %arg4[%c0, %c0_1] : memref<8x1xf32, #tpu.memory_space<vmem>>, vector<8x1xf32>
    tpu.vector_store %arg4[%c0, %c0_1], %3 {strides = array<i32>} : memref<8x1xf32, #tpu.memory_space<vmem>>, vector<8x1xf32>,
    %c0_2 = arith.constant 0 : index
    %c0_3 = arith.constant 0 : index
    %5 = vector.load %arg1[%c0_2, %c0_3] : memref<8x128xf32, #tpu.memory_space<vmem>>, vector<8x128xf32>
    %c0_4 = arith.constant 0 : index
    %c0_5 = arith.constant 0 : index
    %6 = vector.load %arg2[%c0_4, %c0_5] : memref<8x128xf32, #tpu.memory_space<vmem>>, vector<8x128xf32>
    %cst_6 = arith.constant dense<0.000000e+00> : vector<8x8xf32>
    %7 = tpu.matmul %5, %6, %cst_6 {dimension_numbers = #tpu.dot_dimension_numbers<[1], [1], [0], [0], [0, 0, 1, 0], [], []>} : vector<8x128xf32>, vector<8x128xf32>, vector<8x8xf32> -> vector<8x8xf32>
    %cst_7 = arith.constant 2.000000e+00 : f32
    %8 = vector.broadcast %cst_7 : f32 to vector<8x8xf32>
    %9 = arith.subf %7, %8 : vector<8x8xf32>
    %10 = math.exp %9 : vector<8x8xf32>
    %c0_8 = arith.constant 0 : index
    %c0_9 = arith.constant 0 : index
    %11 = vector.load %arg4[%c0_8, %c0_9] : memref<8x1xf32, #tpu.memory_space<vmem>>, vector<8x1xf32>
    %cst_10 = arith.constant dense<0.000000e+00> : vector<8xf32>
    %12 = vector.multi_reduction <add>, %10, %cst_10 [1] : vector<8x8xf32> to vector<8xf32>
    %13 = vector.shape_cast %12 : vector<8xf32> to vector<8x1xf32>
    %14 = arith.addf %11, %13 : vector<8x1xf32>
    %c0_11 = arith.constant 0 : index
    %c0_12 = arith.constant 0 : index
    %15 = vector.load %arg4[%c0_11, %c0_12] : memref<8x1xf32, #tpu.memory_space<vmem>>, vector<8x1xf32>
    tpu.vector_store %arg4[%c0_11, %c0_12], %14 {strides = array<i32>} : memref<8x1xf32, #tpu.memory_space<vmem>>, vector<8x1xf32>,
    %c0_13 = arith.constant 0 : index
    %c0_14 = arith.constant 0 : index
    %c0_15 = arith.constant 0 : index
    %16 = vector.load %arg5[%c0_13, %c0_14, %c0_15] : memref<1x1x8xf32, #tpu.memory_space<vmem>>, vector<1x1x8xf32>
    %17 = vector.shape_cast %16 : vector<1x1x8xf32> to vector<1x8xf32>
    %cst_16 = arith.constant dense<0.000000e+00> : vector<8xf32>
    %18 = vector.multi_reduction <add>, %10, %cst_16 [0] : vector<8x8xf32> to vector<8xf32>
    %19 = vector.shape_cast %18 : vector<8xf32> to vector<1x8xf32>
    %20 = arith.addf %17, %19 : vector<1x8xf32>
    %c0_17 = arith.constant 0 : index
    %c0_18 = arith.constant 0 : index
    %c0_19 = arith.constant 0 : index
    %21 = vector.load %arg5[%c0_17, %c0_18, %c0_19] : memref<1x1x8xf32, #tpu.memory_space<vmem>>, vector<1x1x8xf32>
    %22 = vector.shape_cast %21 : vector<1x1x8xf32> to vector<1x8xf32>
    %23 = vector.shape_cast %20 : vector<1x8xf32> to vector<1x1x8xf32>
    tpu.vector_store %arg5[%c0_17, %c0_18, %c0_19], %23 {strides = array<i32>} : memref<1x1x8xf32, #tpu.memory_space<vmem>>, vector<1x1x8xf32>,
    %c8_i32 = arith.constant 8 : i32
    %24 = arith.muli %arg0, %c8_i32 : i32
    %25 = tpu.assume_multiple %24, 8 : i32
    %26 = arith.index_cast %25 : i32 to index
    %c0_20 = arith.constant 0 : index
    %27 = vector.load %arg2[%26, %c0_20] : memref<8x128xf32, #tpu.memory_space<vmem>>, vector<8x128xf32>
    %28 = arith.mulf %5, %27 : vector<8x128xf32>
    %29 = vector.shape_cast %28 : vector<8x128xf32> to vector<1x8x128xf32>
    %cst_21 = arith.constant dense<0.000000e+00> : vector<1xf32>
    %30 = vector.multi_reduction <add>, %29, %cst_21 [1, 2] : vector<1x8x128xf32> to vector<1xf32>
    %31 = vector.shape_cast %30 : vector<1xf32> to vector<1x1x1xf32>
    %32 = vector.extract %31[0, 0, 0] : f32 from vector<1x1x1xf32>
    %c0_22 = arith.constant 0 : index
    %33 = memref.load %arg6[%c0_22] : memref<1xf32, #tpu.memory_space<smem>>
    %cst_23 = arith.constant 8.000000e+00 : f32
    %cst_24 = arith.constant 2.000000e+00 : f32
    %34 = arith.mulf %cst_23, %cst_24 : f32
    %c0_25 = arith.constant 0 : index
    %c0_26 = arith.constant 0 : index
    %35 = vector.load %arg4[%c0_25, %c0_26] : memref<8x1xf32, #tpu.memory_space<vmem>>, vector<8x1xf32>
    %36 = math.log %35 : vector<8x1xf32>
    %37 = vector.shape_cast %36 : vector<8x1xf32> to vector<1x8x1xf32>
    %cst_27 = arith.constant dense<0.000000e+00> : vector<1xf32>
    %38 = vector.multi_reduction <add>, %37, %cst_27 [1, 2] : vector<1x8x1xf32> to vector<1xf32>
    %39 = vector.shape_cast %38 : vector<1xf32> to vector<1x1x1xf32>
    %40 = vector.extract %39[0, 0, 0] : f32 from vector<1x1x1xf32>
    %41 = arith.addf %34, %40 : f32
    %cst_28 = arith.constant 2.000000e+00 : f32
    %42 = arith.mulf %cst_28, %32 : f32
    %43 = arith.subf %41, %42 : f32
    %44 = arith.addf %33, %43 : f32
    %c0_29 = arith.constant 0 : index
    %45 = memref.load %arg6[%c0_29] : memref<1xf32, #tpu.memory_space<smem>>
    memref.store %44, %arg6[%c0_29] : memref<1xf32, #tpu.memory_space<smem>>
    %c0_i32_30 = arith.constant 0 : i32
    %46 = arith.cmpi eq, %arg0, %c0_i32_30 : i32
    %47 = arith.extui %46 : i1 to i32
    %cst_31 = arith.constant 2.000000e+00 : f32
    %c0_i32_32 = arith.constant 0 : i32
    %48 = arith.cmpi ne, %47, %c0_i32_32 : i32
    scf.if %48 {
      %cst_33 = arith.constant 8.000000e+00 : f32
      %49 = arith.mulf %cst_33, %cst_31 : f32
      %c0_34 = arith.constant 0 : index
      %c0_35 = arith.constant 0 : index
      %c0_36 = arith.constant 0 : index
      %50 = vector.load %arg5[%c0_34, %c0_35, %c0_36] : memref<1x1x8xf32, #tpu.memory_space<vmem>>, vector<1x1x8xf32>
      %51 = math.log %50 : vector<1x1x8xf32>
      %52 = vector.shape_cast %51 : vector<1x1x8xf32> to vector<1x1x1x8xf32>
      %cst_37 = arith.constant dense<0.000000e+00> : vector<1xf32>
      %53 = vector.multi_reduction <add>, %52, %cst_37 [1, 2, 3] : vector<1x1x1x8xf32> to vector<1xf32>
      %54 = vector.shape_cast %53 : vector<1xf32> to vector<1x1x1x1xf32>
      %55 = vector.extract %54[0, 0, 0, 0] : f32 from vector<1x1x1x1xf32>
      %56 = arith.addf %49, %55 : f32
      %c0_38 = arith.constant 0 : index
      %57 = memref.load %arg6[%c0_38] : memref<1xf32, #tpu.memory_space<smem>>
      %58 = arith.addf %57, %56 : f32
      %cst_39 = arith.constant 1.600000e+01 : f32
      %59 = arith.divf %58, %cst_39 : f32
      %c0_40 = arith.constant 0 : index
      %c0_41 = arith.constant 0 : index
      %60 = memref.load %arg3[%c0_40, %c0_41] : memref<1x1xf32, #tpu.memory_space<smem>>
      memref.store %59, %arg3[%c0_40, %c0_41] : memref<1x1xf32, #tpu.memory_space<smem>>
    } else {
    }
    return
  }
  func.func @transform_0(%arg0: i32) -> (i32, i32) {
    %c0_i32 = arith.constant 0 : i32
    %c0_i32_0 = arith.constant 0 : i32
    return %arg0, %c0_i32 : i32, i32
  }
  func.func @transform_1(%arg0: i32) -> (i32, i32) {
    %c0_i32 = arith.constant 0 : i32
    %c0_i32_0 = arith.constant 0 : i32
    %c0_i32_1 = arith.constant 0 : i32
    return %c0_i32, %c0_i32_0 : i32, i32
  }
  func.func @transform_2(%arg0: i32) -> (i32, i32) {
    %c0_i32 = arith.constant 0 : i32
    %c0_i32_0 = arith.constant 0 : i32
    %c0_i32_1 = arith.constant 0 : i32
    return %c0_i32, %c0_i32_0 : i32, i32
  }
}

</mosaic_0001>

<bundles_post_ra>
// kernel: tpu_custom_call.1
= control target key start
LH: loop header
LB: loop body
LE: loop exit
PB: predicated region body
PF: predicated region fallthrough
CT: control target
= control target key end

     0   :  { %7 = vsyncpa [#allocation6], 0  ;;  %s324_s0 = inlined_call_operand.hbm [shape: f32[8,128], index: 0, kind: input, shape index: {}]   ;;  %s325_s1 = inlined_call_operand.hbm [shape: f32[8,128], index: 1, kind: input, shape index: {}]   ;;  %s326_s2 = inlined_call_operand.hbm [shape: f32[1,1], index: 2, kind: output, shape index: {}]  }
   0x1   :  { %8 = vsyncpa [#allocation9], 0 }
   0x2   :  { %9 = vsyncpa [#allocation7], 0  ;;  %s289_s9 = smov [#allocation5]   ;;  %s290_s11 = smov [#allocation8]  }
   0x3   :  { %s16_s10 = sshll.u32 %s289_s9, 4  ;;  %s26_s12 = sshll.u32 %s290_s11, 4  ;;  %s17_s10 = int_to_ptr.vmem [resolvable:$true] %s16_s10  ;;  %s27_s12 = int_to_ptr.vmem [resolvable:$true] %s26_s12 }
   0x4   :  { %s243_s13 = scalar_lea.vmem %s17_s10, 128  ;;  %p248_p1 = scmp.lt.s32.totalorder %s17_s10, %s17_s10 }
   0x5   :  { %p244_p0 = scmp.ne.s32.totalorder %s17_s10, %s243_s13  ;;  %p249_p2 = scmp.lt.s32.totalorder %s243_s13, %s243_s13 }
   0x7   :  { %p250_p3 = por %p249_p2, %p248_p1 }
   0x9   :  { %p251_p4 = pnand %p250_p3, %p244_p0 }
   0xb   :  { %254 = shalt.err (!%p251_p4)
}
   0xc   :  { %19 = dma.hbm_to_vmem [thread:$0]  %s324_s0, 128, %s17_s10, [#allocation6]  }
   0xd   :  { %s263_s16 = scalar_lea.vmem %s27_s12, 128  ;;  %p268_p6 = scmp.lt.s32.totalorder %s27_s12, %s27_s12 }
   0xe   :  { %p264_p5 = scmp.ne.s32.totalorder %s27_s12, %s263_s16  ;;  %p269_p7 = scmp.lt.s32.totalorder %s263_s16, %s263_s16 }
  0x10   :  { %p270_p8 = por %p269_p7, %p268_p6 }
  0x12   :  { %p271_p9 = pnand %p270_p8, %p264_p5 }
  0x14   :  { %274 = shalt.err (!%p271_p9)
}
  0x15   :  { %29 = dma.hbm_to_vmem [thread:$0]  %s325_s1, 128, %s27_s12, [#allocation9]  }
  0x16   :  { %283 = dma.done.wait [#allocation6], 128  }
  0x17   :  { %284 = vsyncadd [#allocation6], 4294967168 }
  0x18   :  { %285 = dma.done.wait [#allocation9], 128  }
  0x19   :  { %286 = vsyncadd [#allocation9], 4294967168  ;;  %v291_v0 = vmov 0.0   ;;  %vm292_vm0 = vmmov 0   ;;  %v47_v1 = vld [vmem:[#allocation8] sm:$0xff]  ;;  %v46_v2 = vld [vmem:[#allocation5] sm:$0xff] }
  0x1a   :  { %213 = vmatprep.subr.mxu0 %v291_v0  ;;  %215 = vmatprep.mubr.msk.f32.mxu0 %vm292_vm0, %v291_v0  ;;  %vm42_vm1 = vcmask 57344   ;;  %vm44_vm2 = vcmask 7168   ;;  %vm122_vm3 = vcmask 64512   ;;  %v141_v16 = vmul.f32 %v47_v1, %v46_v2  ;;  %s293_s26 = smov [#allocation10]  }
  0x1b   :  { %214 = vmatpush3.xpose.msra.mxu0 %v47_v1  ;;  %43 = vst.msk [vmem:[#allocation3] sm:$0x1] %vm42_vm1, %v291_v0 }
  0x1c   :  { %45 = vst.msk [vmem:[#allocation2] sm:$0xff] %vm44_vm2, %v291_v0 }
  0x1e   :  { %216 = vmatmul.mubr.f32.vlgmr.msra.gmra.mxu0 %v46_v2 }
  0x22   :  { %v128_v14 = vld [vmem:[#allocation3] sm:$0x1] }
  0x23   :  { %v121_v18 = vld [vmem:[#allocation2] sm:$0xff] }
  0xde   :  { %v114_v3 = vpop.f32.mrf.mxu0 }
  0xdf   :  { %v210_v4 = vadd.f32 -2.0, %v114_v3 }
  0xe0   :  { %v217_v5 = vpop.f32.mrf.mxu0 }
  0xe1   :  { %v119_v6 = vmul.f32 1.442695, %v210_v4 }
  0xe3   :  { %229 = vpow2.f32 %v119_v6 }
  0xf0   :  { %v230_v7 = vpop.eup %229 }
  0xf1   :  { %v123_v8 = vsel %vm122_vm3, %v230_v7, 0.0 }
  0xf2   :  { %124 = vadd.xlane.f32.xlu0 %v123_v8  ;;  %v129_v9 = vrot.slane %v123_v8, 4 }
  0xf4   :  { %v130_v10 = vadd.f32 %v129_v9, %v123_v8 }
  0xf6   :  { %v131_v11 = vrot.slane %v130_v10, 2  ;;  %142 = vadd.xlane.f32.xlu0 %v141_v16 }
  0xf8   :  { %v132_v12 = vadd.f32 %v131_v11, %v130_v10 }
  0xfa   :  { %v133_v13 = vrot.slane %v132_v12, 1 }
  0xfc   :  { %v134_v15 = vadd.f32 %v133_v13, %v132_v12 }
  0xfe   :  { %v135_v17 = vadd.f32 %v134_v15, %v128_v14 }
 0x100   :  { %137 = vst.msk [vmem:[#allocation3] sm:$0x1] %vm42_vm1, %v135_v17 }
 0x107   :  { %v174_v21 = vld [vmem:[#allocation3] sm:$0x1] }
 0x108   :  { %231 = vlog2.f32 %v174_v21 }
 0x115   :  { %v232_v23 = vpop.eup %231 }
 0x116   :  { %v176_v28 = vmul.f32 0.6931472, %v232_v23 }
 0x118   :  { %v177_v30 = vsel %vm42_vm1, %v176_v28, 0.0 }
 0x17b   :  { %v125_v19 = vpop.xlane.xlu0 %124 }
 0x17c   :  { %v126_v20 = vadd.f32 %v125_v19, %v121_v18 }
 0x17e   :  { %127 = vst.msk [vmem:[#allocation2] sm:$0xff] %vm44_vm2, %v126_v20 }
 0x17f   :  { %v143_v26 = vpop.xlane.xlu0 %142 }
 0x180   :  { %v144_v29 = vrot.slane %v143_v26, 4 }
 0x182   :  { %v145_v31 = vadd.f32 %v144_v29, %v143_v26 }
 0x184   :  { %v146_v32 = vrot.slane %v145_v31, 2 }
 0x185   :  { %v152_v22 = vld [vmem:[#allocation2] sm:$0xff] }
 0x186   :  { %233 = vlog2.f32 %v152_v22  ;;  %v147_v33 = vadd.f32 %v146_v32, %v145_v31 }
 0x188   :  { %v148_v34 = vrot.slane %v147_v33, 1 }
 0x18a   :  { %v149_v35 = vadd.f32 %v148_v34, %v147_v33 }
 0x18c   :  { %218 = vpush %v149_v35 }
 0x193   :  { %v234_v24 = vpop.eup %233 }
 0x194   :  { %v154_v25 = vmul.f32 0.6931472, %v234_v24 }
 0x196   :  { %v155_v27 = vsel %vm44_vm2, %v154_v25, 0.0 }
 0x197   :  { %156 = vadd.xlane.f32.xlu1 %v155_v27 }
 0x19b   :  { %178 = vadd.xlane.f32.xlu1 %v177_v30 }
 0x1bd   :  { %s219_s0 = spop %218 }
 0x1be   :  { %s166_s20 = smul.f32 2.0, %s219_s0 }
 0x220   :  { %v157_v36 = vpop.xlane.xlu1 %156 }
 0x221   :  { %v158_v37 = vrot.slane %v157_v36, 4 }
 0x223   :  { %v159_v38 = vadd.f32 %v158_v37, %v157_v36 }
 0x224   :  { %v179_v39 = vpop.xlane.xlu1 %178 }
 0x225   :  { %v160_v40 = vrot.slane %v159_v38, 2  ;;  %v180_v41 = vrot.slane %v179_v39, 4 }
 0x227   :  { %v181_v42 = vadd.f32 %v180_v41, %v179_v39  ;;  %v161_v43 = vadd.f32 %v160_v40, %v159_v38 }
 0x229   :  { %v182_v44 = vrot.slane %v181_v42, 2  ;;  %v162_v45 = vrot.slane %v161_v43, 1 }
 0x22b   :  { %v183_v46 = vadd.f32 %v182_v44, %v181_v42  ;;  %v163_v47 = vadd.f32 %v162_v45, %v161_v43 }
 0x22d   :  { %220 = vpush %v163_v47  ;;  %v184_v48 = vrot.slane %v183_v46, 1 }
 0x22f   :  { %v185_v49 = vadd.f32 %v184_v48, %v183_v46 }
 0x231   :  { %222 = vpush %v185_v49 }
 0x25e   :  { %s221_s1 = spop %220 }
 0x25f   :  { %s165_s19 = sadd.f32 16.0, %s221_s1 }
 0x261   :  { %s167_s21 = ssub.f32 %s165_s19, %s166_s20 }
 0x262   :  { %s223_s22 = spop %222 }
 0x263   :  { %s187_s23 = sadd.f32 16.0, %s223_s22 }
 0x265   :  { %s189_s24 = sadd.f32 %s187_s23, %s167_s21 }
 0x267   :  { %s192_s25 = smul.f32 0.0625, %s189_s24 }
 0x269   :  { %194 = sst [smem:[#allocation10]] %s192_s25 }
 0x26a   :  { %202 = dma.smem_to_hbm %s293_s26, 16, %s326_s2, [#allocation7]  }
 0x26b   :  { %287 = dma.done.wait [#allocation7], 16  }
 0x26c   :  { %288 = vsyncadd [#allocation7], 4294967280 }
 0x26d   :  { %206 = sfence }
 0x26e   :  { %207 = vsyncpa [#allocation6], 1 }
 0x26f   :  { %208 = vsyncpa [#allocation9], 1 }
 0x270   :  { %209 = vsyncpa [#allocation7], 1 }

</bundles_post_ra>
